<compile_context>
chip_gen: v6e
topology: v6e:2x2x1
jax: 0.10.0
libtpu: 0.0.40
codegen_flags: <defaults>
</compile_context>

<pallas_src>
import jax
import jax.numpy as jnp
from jax.experimental import pallas as pl
from jax.experimental.pallas import tpu as pltpu

BN_EPS = 1e-5          # PyTorch BatchNorm2d default
_CONV_CHUNK = 32       # channels reduced per step of the folded 1x1 conv


def _value_net_kernel(x_ref, wc_ref, bc_ref, w1_ref, b1_ref, w2_ref, b2_ref,
                      out_ref):
    # x_ref : (TN, C, HW) VMEM, f32 or bf16 -- batch tile of x (NCHW reshaped)
    # wc_ref: (1, C, 1)   f32 -- 1x1 conv weight with BN scale folded in
    # bc_ref: (1, 1)      f32 -- conv bias with BN shift folded in
    # w1_ref: (HW, Hd)    f32 ; b1_ref: (1, Hd) f32
    # w2_ref: (Hd, 1)     f32 ; b2_ref: (1, 1)  f32
    # out_ref: (TN, 1)    f32
    c_total = x_ref.shape[1]

    # --- folded 1x1 conv + BN:  y[n, p] = sum_c x[n, c, p] * wc[c] + bc -------
    # Chunk the channel reduction so we never materialise a full (TN, C, HW)
    # f32 product; only one (TN, chunk, HW) temporary is live at a time.
    y = None
    for c0 in range(0, c_total, _CONV_CHUNK):
        cs = min(_CONV_CHUNK, c_total - c0)
        xc = x_ref[:, c0:c0 + cs, :].astype(jnp.float32)        # (TN, cs, HW)
        part = jnp.sum(xc * wc_ref[:, c0:c0 + cs, :], axis=1)   # (TN, HW)
        y = part if y is None else y + part
    y = jnp.maximum(y + bc_ref[...], 0.0)                       # ReLU, (TN, HW)

    # --- fc1 + ReLU (MXU) -----------------------------------------------------
    h = jnp.dot(y, w1_ref[...], preferred_element_type=jnp.float32) + b1_ref[...]
    h = jnp.maximum(h, 0.0)                                     # (TN, 256)

    # --- fc2 + tanh -------------------------------------------------------------
    o = jnp.dot(h, w2_ref[...], preferred_element_type=jnp.float32) + b2_ref[...]
    out_ref[...] = jnp.tanh(o)                                  # (TN, 1)


def _vmem_capacity_bytes(default=64 * 1024 * 1024):
    try:
        info = pltpu.get_tpu_info()
        return int(getattr(info, "vmem_capacity_bytes", default))
    except Exception:
        return default


def value_net_forward(x_nchw, params, *, max_batch_tile=256, x_dtype=None):
    """ValueNet forward. x_nchw: (N, C, H, W) -> (N, 1) float32 in [-1, 1].

    Streams x in its own dtype: pass bf16 inputs (or set x_dtype=jnp.bfloat16)
    to halve HBM traffic; the kernel upcasts to f32 internally (v5e-safe).
    """
    N, C, H, W = x_nchw.shape
    HW = H * W
    hidden = params["w1"].shape[1]

    if x_dtype is not None and x_nchw.dtype != x_dtype:
        x_nchw = x_nchw.astype(x_dtype)
    x = x_nchw.reshape(N, C, HW)            # free, contiguous NCHW reshape
    x_bytes = jnp.dtype(x.dtype).itemsize

    # --- fold eval-mode BatchNorm + conv bias into the 1x1 conv weights -------
    gamma, beta, mean, var = params["bn"]
    inv = gamma * jax.lax.rsqrt(var + BN_EPS)
    wc = (params["wc"] * inv).astype(jnp.float32).reshape(1, C, 1)
    bc = ((params["bc"][0] - mean) * inv + beta).astype(jnp.float32).reshape(1, 1)

    # --- generation-aware VMEM budgeting ---------------------------------------
    vmem_cap = _vmem_capacity_bytes()
    # Leave 16 MiB headroom: v7x 64->48 MiB, v5e/v6e 128->112 MiB.
    vmem_limit = max(32 * 1024 * 1024, vmem_cap - 16 * 1024 * 1024)

    # Per batch-row VMEM cost: double-buffered x block + f32 conv chunk temp
    # + y / h activation rows.
    per_row = (2 * C * HW * x_bytes
               + 4 * (min(C, _CONV_CHUNK) * HW + HW + hidden + 8))
    param_bytes = 4 * (C + 1 + HW * hidden + 2 * hidden + 2)
    avail = int(vmem_limit * 0.6) - 2 * param_bytes   # headroom for Mosaic scratch

    tn = min(N, max_batch_tile, max(1, avail // per_row))
    if tn < N:
        tn = (tn // 8) * 8        # sublane-aligned tiles, (8,128)-friendly blocks
        if tn < 8:
            raise ValueError(
                "ValueNet kernel: C*H*W too large for an 8-row batch tile "
                "within the VMEM budget; reduce the model size or the budget headroom.")
    # Give v7x's two TensorCores something to split when the batch is large.
    if tn >= N and N >= 64:
        tn = max(32, ((pl.cdiv(N, 2) + 7) // 8) * 8)

    grid = (pl.cdiv(N, tn),)      # no wrapper padding: trailing partial block
                                  # is masked on store by Pallas

    cost = pl.CostEstimate(
        flops=2 * N * (C * HW + HW * hidden + hidden),
        transcendentals=N,
        bytes_accessed=N * C * HW * x_bytes + param_bytes + N * 4,
    )

    out = pl.pallas_call(
        _value_net_kernel,
        out_shape=jax.ShapeDtypeStruct((N, 1), jnp.float32),
        grid=grid,
        in_specs=[
            pl.BlockSpec((tn, C, HW), lambda i: (i, 0, 0)),   # x: streamed per batch tile
            pl.BlockSpec((1, C, 1), lambda i: (0, 0, 0)),     # folded conv weight (resident)
            pl.BlockSpec((1, 1), lambda i: (0, 0)),           # folded conv bias
            pl.BlockSpec((HW, hidden), lambda i: (0, 0)),     # w1 (resident)
            pl.BlockSpec((1, hidden), lambda i: (0, 0)),      # b1
            pl.BlockSpec((hidden, 1), lambda i: (0, 0)),      # w2
            pl.BlockSpec((1, 1), lambda i: (0, 0)),           # b2
        ],
        out_specs=pl.BlockSpec((tn, 1), lambda i: (i, 0)),
        compiler_params=pltpu.CompilerParams(
            dimension_semantics=("parallel",),
            vmem_limit_bytes=vmem_limit,
        ),
        cost_estimate=cost,
    )(x, wc, bc, params["w1"], params["b1"], params["w2"], params["b2"])
    return out


def init_params(key, inplanes, hw, hidden=256):
    ks = jax.random.split(key, 8)
    scale = 0.1
    wc = scale * jax.random.normal(ks[0], (inplanes,), jnp.float32)
    bc = scale * jax.random.normal(ks[1], (1,), jnp.float32)
    # BN: [gamma, beta, running_mean, running_var]  (var must be > 0)
    gamma = 1.0 + scale * jax.random.normal(ks[2], (1,), jnp.float32)
    beta = scale * jax.random.normal(ks[3], (1,), jnp.float32)
    rmean = scale * jax.random.normal(ks[4], (1,), jnp.float32)
    rvar = jnp.abs(scale * jax.random.normal(ks[5], (1,), jnp.float32)) + 1.0
    bn = jnp.concatenate([gamma, beta, rmean, rvar]).astype(jnp.float32)
    w1 = scale * jax.random.normal(ks[6], (hw, hidden), jnp.float32)
    b1 = scale * jax.random.normal(ks[7], (1, hidden), jnp.float32)
    w2 = scale * jax.random.normal(jax.random.fold_in(key, 99), (hidden, 1), jnp.float32)
    b2 = scale * jax.random.normal(jax.random.fold_in(key, 100), (1, 1), jnp.float32)
    return dict(wc=wc, bc=bc, bn=bn, w1=w1, b1=b1, w2=w2, b2=b2)


def value_net_reference(x_nchw, params):
    """Pure-JAX reference mirroring the PyTorch forward (eval-mode BN)."""
    N, C, H, W = x_nchw.shape
    conv = jnp.einsum("nchw,c->nhw", x_nchw, params["wc"]) + params["bc"][0]
    gamma, beta, mean, var = params["bn"]
    y = (conv - mean) / jnp.sqrt(var + BN_EPS) * gamma + beta
    y = jax.nn.relu(y).reshape(N, H * W)
    h = jax.nn.relu(y @ params["w1"] + params["b1"])
    return jnp.tanh(h @ params["w2"] + params["b2"])


if __name__ == "__main__":
    # Small shapes: batch=2, inplanes=4, board 8x8 -> outplanes = 8*8 + 1 = 65
    N, C, H, W = 2, 4, 8, 8
    HW = H * W

    key = jax.random.PRNGKey(0)
    k_x, k_p, k_x2 = jax.random.split(key, 3)
    x = jax.random.normal(k_x, (N, C, H, W), jnp.float32)
    params = init_params(k_p, C, HW)

    # f32 streaming path: exact parity with the f32 reference.
    out = jax.block_until_ready(value_net_forward(x, params))
    ref = value_net_reference(x, params)
    assert out.shape == (N, 1)
    assert jnp.all(jnp.abs(out) <= 1.0)
    assert jnp.allclose(out, ref, atol=1e-4, rtol=1e-4), (out, ref)

    # bf16 streaming path + multi-step grid with a partial trailing batch tile
    # (no wrapper padding): N=13, tile=8 -> grid of 2 with masked last block.
    N2 = 13
    x2 = jax.random.normal(k_x2, (N2, C, H, W), jnp.float32)
    out2 = jax.block_until_ready(
        value_net_forward(x2.astype(jnp.bfloat16), params, max_batch_tile=8))
    ref2 = value_net_reference(x2, params)
    assert out2.shape == (N2, 1)
    assert jnp.all(jnp.abs(out2) <= 1.0)
    assert jnp.allclose(out2, ref2, atol=3e-2), (out2, ref2)

    print("KERNEL_OK")
</pallas_src>

<mosaic_0001>
module attributes {stable_mosaic.version = 11 : i64} {
  func.func @_value_net_kernel(%arg0: i32, %arg1: memref<2x4x64xf32, #tpu.memory_space<vmem>>, %arg2: memref<1x4x1xf32, #tpu.memory_space<vmem>>, %arg3: memref<1x1xf32, #tpu.memory_space<vmem>>, %arg4: memref<64x256xf32, #tpu.memory_space<vmem>>, %arg5: memref<1x256xf32, #tpu.memory_space<vmem>>, %arg6: memref<256x1xf32, #tpu.memory_space<vmem>>, %arg7: memref<1x1xf32, #tpu.memory_space<vmem>>, %arg8: memref<2x1xf32, #tpu.memory_space<vmem>>) attributes {dimension_semantics = [#tpu.dimension_semantics<parallel>], iteration_bounds = array<i64: 1>, scalar_prefetch = 0 : i64, scratch_operands = 0 : i64, tpu.core_type = #tpu.core_type<tc>, window_params = [{transform_indices = @transform_0, window_bounds = array<i64: 2, 4, 64>}, {pipeline_mode = #tpu.pipeline_mode<synchronous>, transform_indices = @transform_1, window_bounds = array<i64: 1, 4, 1>}, {pipeline_mode = #tpu.pipeline_mode<synchronous>, transform_indices = @transform_2, window_bounds = array<i64: 1, 1>}, {pipeline_mode = #tpu.pipeline_mode<synchronous>, transform_indices = @transform_3, window_bounds = array<i64: 64, 256>}, {pipeline_mode = #tpu.pipeline_mode<synchronous>, transform_indices = @transform_4, window_bounds = array<i64: 1, 256>}, {pipeline_mode = #tpu.pipeline_mode<synchronous>, transform_indices = @transform_5, window_bounds = array<i64: 256, 1>}, {pipeline_mode = #tpu.pipeline_mode<synchronous>, transform_indices = @transform_6, window_bounds = array<i64: 1, 1>}, {transform_indices = @transform_7, window_bounds = array<i64: 2, 1>}]} {
    %c0 = arith.constant 0 : index
    %c0_0 = arith.constant 0 : index
    %c0_1 = arith.constant 0 : index
    %0 = vector.load %arg1[%c0, %c0_0, %c0_1] : memref<2x4x64xf32, #tpu.memory_space<vmem>>, vector<2x4x64xf32>
    %c0_2 = arith.constant 0 : index
    %c0_3 = arith.constant 0 : index
    %c0_4 = arith.constant 0 : index
    %1 = vector.load %arg2[%c0_2, %c0_3, %c0_4] : memref<1x4x1xf32, #tpu.memory_space<vmem>>, vector<1x4x1xf32>
    %2 = vector.broadcast %1 : vector<1x4x1xf32> to vector<2x4x64xf32>
    %3 = arith.mulf %0, %2 : vector<2x4x64xf32>
    %cst = arith.constant dense<0.000000e+00> : vector<2x64xf32>
    %4 = vector.multi_reduction <add>, %3, %cst [1] : vector<2x4x64xf32> to vector<2x64xf32>
    %c0_5 = arith.constant 0 : index
    %c0_6 = arith.constant 0 : index
    %5 = vector.load %arg3[%c0_5, %c0_6] : memref<1x1xf32, #tpu.memory_space<vmem>>, vector<1x1xf32>
    %6 = vector.broadcast %5 : vector<1x1xf32> to vector<2x64xf32>
    %7 = arith.addf %4, %6 : vector<2x64xf32>
    %cst_7 = arith.constant 0.000000e+00 : f32
    %8 = vector.broadcast %cst_7 : f32 to vector<2x64xf32>
    %9 = arith.maximumf %7, %8 : vector<2x64xf32>
    %c0_8 = arith.constant 0 : index
    %c0_9 = arith.constant 0 : index
    %10 = vector.load %arg4[%c0_8, %c0_9] : memref<64x256xf32, #tpu.memory_space<vmem>>, vector<64x256xf32>
    %cst_10 = arith.constant dense<0.000000e+00> : vector<2x256xf32>
    %11 = tpu.matmul %9, %10, %cst_10 {dimension_numbers = #tpu.dot_dimension_numbers<[1], [0], [0], [1], [0, 0, 1, 1], [], []>} : vector<2x64xf32>, vector<64x256xf32>, vector<2x256xf32> -> vector<2x256xf32>
    %c0_11 = arith.constant 0 : index
    %c0_12 = arith.constant 0 : index
    %12 = vector.load %arg5[%c0_11, %c0_12] : memref<1x256xf32, #tpu.memory_space<vmem>>, vector<1x256xf32>
    %13 = vector.broadcast %12 : vector<1x256xf32> to vector<2x256xf32>
    %14 = arith.addf %11, %13 : vector<2x256xf32>
    %cst_13 = arith.constant 0.000000e+00 : f32
    %15 = vector.broadcast %cst_13 : f32 to vector<2x256xf32>
    %16 = arith.maximumf %14, %15 : vector<2x256xf32>
    %c0_14 = arith.constant 0 : index
    %c0_15 = arith.constant 0 : index
    %17 = vector.load %arg6[%c0_14, %c0_15] : memref<256x1xf32, #tpu.memory_space<vmem>>, vector<256x1xf32>
    %cst_16 = arith.constant dense<0.000000e+00> : vector<2x1xf32>
    %18 = tpu.matmul %16, %17, %cst_16 {dimension_numbers = #tpu.dot_dimension_numbers<[1], [0], [0], [1], [0, 0, 1, 1], [], []>} : vector<2x256xf32>, vector<256x1xf32>, vector<2x1xf32> -> vector<2x1xf32>
    %c0_17 = arith.constant 0 : index
    %c0_18 = arith.constant 0 : index
    %19 = vector.load %arg7[%c0_17, %c0_18] : memref<1x1xf32, #tpu.memory_space<vmem>>, vector<1x1xf32>
    %20 = vector.broadcast %19 : vector<1x1xf32> to vector<2x1xf32>
    %21 = arith.addf %18, %20 : vector<2x1xf32>
    %22 = math.tanh %21 : vector<2x1xf32>
    %c0_19 = arith.constant 0 : index
    %c0_20 = arith.constant 0 : index
    %23 = vector.load %arg8[%c0_19, %c0_20] : memref<2x1xf32, #tpu.memory_space<vmem>>, vector<2x1xf32>
    tpu.vector_store %arg8[%c0_19, %c0_20], %22 {strides = array<i32>} : memref<2x1xf32, #tpu.memory_space<vmem>>, vector<2x1xf32>,
    return
  }
  func.func @transform_0(%arg0: i32) -> (i32, i32, i32) {
    %c0_i32 = arith.constant 0 : i32
    %c0_i32_0 = arith.constant 0 : i32
    %c0_i32_1 = arith.constant 0 : i32
    return %arg0, %c0_i32, %c0_i32_0 : i32, i32, i32
  }
  func.func @transform_1(%arg0: i32) -> (i32, i32, i32) {
    %c0_i32 = arith.constant 0 : i32
    %c0_i32_0 = arith.constant 0 : i32
    %c0_i32_1 = arith.constant 0 : i32
    %c0_i32_2 = arith.constant 0 : i32
    return %c0_i32, %c0_i32_0, %c0_i32_1 : i32, i32, i32
  }
  func.func @transform_2(%arg0: i32) -> (i32, i32) {
    %c0_i32 = arith.constant 0 : i32
    %c0_i32_0 = arith.constant 0 : i32
    %c0_i32_1 = arith.constant 0 : i32
    return %c0_i32, %c0_i32_0 : i32, i32
  }
  func.func @transform_3(%arg0: i32) -> (i32, i32) {
    %c0_i32 = arith.constant 0 : i32
    %c0_i32_0 = arith.constant 0 : i32
    %c0_i32_1 = arith.constant 0 : i32
    return %c0_i32, %c0_i32_0 : i32, i32
  }
  func.func @transform_4(%arg0: i32) -> (i32, i32) {
    %c0_i32 = arith.constant 0 : i32
    %c0_i32_0 = arith.constant 0 : i32
    %c0_i32_1 = arith.constant 0 : i32
    return %c0_i32, %c0_i32_0 : i32, i32
  }
  func.func @transform_5(%arg0: i32) -> (i32, i32) {
    %c0_i32 = arith.constant 0 : i32
    %c0_i32_0 = arith.constant 0 : i32
    %c0_i32_1 = arith.constant 0 : i32
    return %c0_i32, %c0_i32_0 : i32, i32
  }
  func.func @transform_6(%arg0: i32) -> (i32, i32) {
    %c0_i32 = arith.constant 0 : i32
    %c0_i32_0 = arith.constant 0 : i32
    %c0_i32_1 = arith.constant 0 : i32
    return %c0_i32, %c0_i32_0 : i32, i32
  }
  func.func @transform_7(%arg0: i32) -> (i32, i32) {
    %c0_i32 = arith.constant 0 : i32
    %c0_i32_0 = arith.constant 0 : i32
    return %arg0, %c0_i32 : i32, i32
  }
}

</mosaic_0001>

<bundles_post_ra>
// kernel: tpu_custom_call.1
= control target key start
LH: loop header
LB: loop body
LE: loop exit
PB: predicated region body
PF: predicated region fallthrough
CT: control target
= control target key end

     0   :  { %v336_v0 = vmov 0   ;;  %v337_v20 = vmov 0.0   ;;  %vm40_vm0 = vcmask 519168   ;;  %vm99_vm1 = vcmask 1041409   ;;  %s543_s1 = inlined_call_operand.vmem [shape: f32[1,4,1], index: 1, kind: input, shape index: {}]   ;;  %s544_s2 = inlined_call_operand.<no memory space> [shape: f32[1,1], index: 2, kind: input, shape index: {}]   ;;  %s545_s3 = inlined_call_operand.vmem [shape: f32[64,256], index: 3, kind: input, shape index: {}]   ;;  %s546_s5 = inlined_call_operand.vmem [shape: f32[256,1], index: 5, kind: input, shape index: {}]   ;;  %s547_s0 = inlined_call_operand.vmem [shape: f32[2,4,64], index: 0, kind: input, shape index: {}]   ;;  %s548_s4 = inlined_call_operand.vmem [shape: f32[1,256], index: 4, kind: input, shape index: {}]   ;;  %s549_s6 = inlined_call_operand.<no memory space> [shape: f32[1,1], index: 6, kind: input, shape index: {}]   ;;  %s550_s7 = inlined_call_operand.vmem [shape: f32[2,1], index: 7, kind: output, shape index: {}]  }
   0x1   :  { %333 = vset.pattern.permute.xlu0 %v336_v0  ;;  %v32_v1 = vld [vmem:[%s543_s1] sm:$0xf]  ;;  %v12_v2 = vstv %s544_s2  ;;  %v84_v3 = vld [vmem:[%s545_s3 + $0x78] sm:$0xff]  ;;  %v83_v4 = vld [vmem:[%s545_s3 + $0x70] sm:$0xff]  ;;  %168 = vmatprep.mubr.f32.mxu0 %v337_v20  ;;  %vm101_vm2 = vcmask 523264   ;;  %vm287_vm3 = vcmask 1024  }
   0x2   :  { %35 = vperm.xlu0 %333, %v32_v1   ;;  %13 = vst [vmem:[#allocation2] sm:$0x1] %v12_v2  ;;  %120 = vmatprep.subr.mxu0 %v84_v3  ;;  %v82_v5 = vld [vmem:[%s545_s3 + $0x68] sm:$0xff]  ;;  %v81_v6 = vld [vmem:[%s545_s3 + $0x60] sm:$0xff]  ;;  %v80_v7 = vld [vmem:[%s545_s3 + $0x58] sm:$0xff] }
   0x3   :  { %121 = vmatpush1.msra.mxu0 %v83_v4  ;;  %v79_v8 = vld [vmem:[%s545_s3 + $0x50] sm:$0xff]  ;;  %v78_v9 = vld [vmem:[%s545_s3 + $0x48] sm:$0xff]  ;;  %v77_v10 = vld [vmem:[%s545_s3 + $0x40] sm:$0xff] }
   0x4   :  { %122 = vmatprep.subr.mxu0 %v82_v5  ;;  %v76_v12 = vld [vmem:[%s545_s3 + $0x38] sm:$0xff]  ;;  %v75_v13 = vld [vmem:[%s545_s3 + $0x30] sm:$0xff]  ;;  %v74_v14 = vld [vmem:[%s545_s3 + $0x28] sm:$0xff] }
   0x5   :  { %123 = vmatpush1.msra.mxu0 %v81_v6  ;;  %v73_v15 = vld [vmem:[%s545_s3 + $0x20] sm:$0xff]  ;;  %v72_v16 = vld [vmem:[%s545_s3 + $0x18] sm:$0xff]  ;;  %v71_v17 = vld [vmem:[%s545_s3 + $0x10] sm:$0xff] }
   0x6   :  { %124 = vmatprep.subr.mxu0 %v80_v7  ;;  %v70_v18 = vld [vmem:[%s545_s3 + $0x8] sm:$0xff]  ;;  %v69_v19 = vld [vmem:[%s545_s3] sm:$0xff]  ;;  %v208_v21 = vld [vmem:[%s546_s5 + $0xf8] sm:$0xff] }
   0x7   :  { %125 = vmatpush1.msra.mxu0 %v79_v8  ;;  %v192_v22 = vld [vmem:[%s546_s5 + $0x78] sm:$0xff]  ;;  %v207_v23 = vld [vmem:[%s546_s5 + $0xf0] sm:$0xff]  ;;  %296 = vmatprep.subr.mxu1 %v208_v21  ;;  %v206_v25 = vld [vmem:[%s546_s5 + $0xe8] sm:$0xff] }
   0x8   :  { %126 = vmatprep.subr.mxu0 %v78_v9  ;;  %v191_v24 = vld [vmem:[%s546_s5 + $0x70] sm:$0xff]  ;;  %297 = vmatpush3.msra.mxu1 %v192_v22  ;;  %v190_v26 = vld [vmem:[%s546_s5 + $0x68] sm:$0xff]  ;;  %v205_v27 = vld [vmem:[%s546_s5 + $0xe0] sm:$0xff] }
   0x9   :  { %v293_v11 = vld [vmem:[#allocation2] ss:$0 sm:$0xff]  ;;  %127 = vmatpush1.msra.mxu0 %v77_v10  ;;  %298 = vmatprep.subr.mxu1 %v207_v23  ;;  %v204_v29 = vld [vmem:[%s546_s5 + $0xd8] sm:$0xff]  ;;  %v203_v31 = vld [vmem:[%s546_s5 + $0xd0] sm:$0xff] }
   0xa   :  { %62 = vperm.xlu0 %333, %v293_v11   ;;  %128 = vmatprep.subr.mxu0 %v76_v12  ;;  %v189_v28 = vld [vmem:[%s546_s5 + $0x60] sm:$0xff]  ;;  %v188_v30 = vld [vmem:[%s546_s5 + $0x58] sm:$0xff]  ;;  %v187_v32 = vld [vmem:[%s546_s5 + $0x50] sm:$0xff] }
   0xb   :  { %129 = vmatpush1.msra.mxu0 %v75_v13  ;;  %299 = vmatpush3.msra.mxu1 %v191_v24  ;;  %v202_v33 = vld [vmem:[%s546_s5 + $0xc8] sm:$0xff]  ;;  %v201_v35 = vld [vmem:[%s546_s5 + $0xc0] sm:$0xff]  ;;  %v200_v37 = vld [vmem:[%s546_s5 + $0xb8] sm:$0xff] }
   0xc   :  { %130 = vmatprep.subr.mxu0 %v74_v14  ;;  %300 = vmatprep.subr.mxu1 %v206_v25  ;;  %v186_v34 = vld [vmem:[%s546_s5 + $0x48] sm:$0xff]  ;;  %v185_v36 = vld [vmem:[%s546_s5 + $0x40] sm:$0xff]  ;;  %v184_v38 = vld [vmem:[%s546_s5 + $0x38] sm:$0xff]  ;;  %v87_v14 = vlaneseq }
   0xd   :  { %131 = vmatpush1.msra.mxu0 %v73_v15  ;;  %301 = vmatpush3.msra.mxu1 %v190_v26  ;;  %v199_v39 = vld [vmem:[%s546_s5 + $0xb0] sm:$0xff]  ;;  %v198_v41 = vld [vmem:[%s546_s5 + $0xa8] sm:$0xff]  ;;  %v197_v43 = vld [vmem:[%s546_s5 + $0xa0] sm:$0xff] }
   0xe   :  { %132 = vmatprep.subr.mxu0 %v72_v16  ;;  %302 = vmatprep.subr.mxu1 %v205_v27  ;;  %v183_v40 = vld [vmem:[%s546_s5 + $0x30] sm:$0xff]  ;;  %v182_v42 = vld [vmem:[%s546_s5 + $0x28] sm:$0xff]  ;;  %v181_v44 = vld [vmem:[%s546_s5 + $0x20] sm:$0xff]  ;;  %v88_v15 = vshrl.u32 %v87_v14, 7  ;;  %v14_v27 = vstv %s549_s6 }
   0xf   :  { %133 = vmatpush1.msra.mxu0 %v71_v17  ;;  %303 = vmatpush3.msra.mxu1 %v189_v28  ;;  %v30_v45 = vld [vmem:[%s547_s0] sm:$0xf]  ;;  %v31_v46 = vld [vmem:[%s547_s0 + $0x4] sm:$0xf]  ;;  %v196_v6 = vld [vmem:[%s546_s5 + $0x98] sm:$0xff] }
  0x10   :  { %134 = vmatprep.subr.mxu0 %v70_v18  ;;  %304 = vmatprep.subr.mxu1 %v204_v29  ;;  %v180_v7 = vld [vmem:[%s546_s5 + $0x18] sm:$0xff]  ;;  %v195_v8 = vld [vmem:[%s546_s5 + $0x90] sm:$0xff]  ;;  %v194_v10 = vld [vmem:[%s546_s5 + $0x88] sm:$0xff]  ;;  %v89_v16 = vsub.s32 0, %v88_v15  ;;  %v93_v18 = vsub.s32 1, %v88_v15 }
  0x11   :  { %135 = vmatpush1.msra.mxu0 %v69_v19  ;;  %305 = vmatpush3.msra.mxu1 %v188_v30  ;;  %v179_v9 = vld [vmem:[%s546_s5 + $0x10] sm:$0xff]  ;;  %v178_v11 = vld [vmem:[%s546_s5 + $0x8] sm:$0xff]  ;;  %v193_v12 = vld [vmem:[%s546_s5 + $0x80] sm:$0xff]  ;;  %15 = vst [vmem:[#allocation3] sm:$0x1] %v14_v27 }
  0x12   :  { %306 = vmatprep.subr.mxu1 %v203_v31  ;;  %v177_v13 = vld [vmem:[%s546_s5] sm:$0xff] }
  0x13   :  { %307 = vmatpush3.msra.mxu1 %v187_v32  ;;  %v85_v17 = vld [vmem:[%s548_s4] sm:$0x3] }
  0x14   :  { %308 = vmatprep.subr.mxu1 %v202_v33  ;;  %v90_v19 = vrot.slane %v85_v17, %v89_v16  ;;  %v94_v20 = vrot.slane %v85_v17, %v93_v18 }
  0x15   :  { %309 = vmatpush3.msra.mxu1 %v186_v34 }
  0x16   :  { %310 = vmatprep.subr.mxu1 %v201_v35 }
  0x17   :  { %311 = vmatpush3.msra.mxu1 %v185_v36 }
  0x18   :  { %312 = vmatprep.subr.mxu1 %v200_v37  ;;  %v295_v29 = vld [vmem:[#allocation3] ss:$0 sm:$0xff] }
  0x19   :  { %313 = vmatpush3.msra.mxu1 %v184_v38 }
  0x1a   :  { %314 = vmatprep.subr.mxu1 %v199_v39 }
  0x1b   :  { %315 = vmatpush3.msra.mxu1 %v183_v40 }
  0x1c   :  { %316 = vmatprep.subr.mxu1 %v198_v41 }
  0x1d   :  { %317 = vmatpush3.msra.mxu1 %v182_v42 }
  0x1e   :  { %318 = vmatprep.subr.mxu1 %v197_v43 }
  0x1f   :  { %319 = vmatpush3.msra.mxu1 %v181_v44 }
  0x20   :  { %320 = vmatprep.subr.mxu1 %v196_v6 }
  0x21   :  { %321 = vmatpush3.msra.mxu1 %v180_v7 }
  0x22   :  { %322 = vmatprep.subr.mxu1 %v195_v8 }
  0x23   :  { %323 = vmatpush3.msra.mxu1 %v179_v9 }
  0x24   :  { %324 = vmatprep.subr.mxu1 %v194_v10 }
  0x25   :  { %325 = vmatpush3.msra.mxu1 %v178_v11 }
  0x26   :  { %326 = vmatprep.subr.mxu1 %v193_v12 }
  0x27   :  { %327 = vmatpush3.msra.mxu1 %v177_v13 }
  0x7d   :  { %v36_v47 = vpop.permute.xlu0 %35 }
  0x7e   :  { %v38_v48 = vmul.f32 %v36_v47, %v30_v45  ;;  %v39_v49 = vmul.f32 %v36_v47, %v31_v46 }
  0x80   :  { %v41_v50 = vsel %vm40_vm0, %v38_v48, 0.0  ;;  %v48_v51 = vsel %vm40_vm0, %v39_v49, 0.0 }
  0x81   :  { %v42_v52 = vrot.slane %v41_v50, 4  ;;  %v49_v53 = vrot.slane %v48_v51, 4 }
  0x83   :  { %v43_v54 = vadd.f32 %v42_v52, %v41_v50  ;;  %v50_v55 = vadd.f32 %v49_v53, %v48_v51 }
  0x85   :  { %v44_v56 = vrot.slane %v43_v54, 2  ;;  %v51_v57 = vrot.slane %v50_v55, 2  ;;  %v63_v0 = vpop.permute.xlu0 %62 }
  0x87   :  { %v45_v58 = vadd.f32 %v44_v56, %v43_v54  ;;  %v52_v59 = vadd.f32 %v51_v57, %v50_v55 }
  0x89   :  { %v46_v60 = vrot.slane %v45_v58, 1  ;;  %v53_v61 = vrot.slane %v52_v59, 1 }
  0x8b   :  { %v47_v62 = vadd.f32 %v46_v60, %v45_v58  ;;  %v54_v63 = vadd.f32 %v53_v61, %v52_v59 }
  0x8d   :  { %v65_v1 = vadd.f32 %v63_v0, %v47_v62  ;;  %v66_v2 = vadd.f32 %v63_v0, %v54_v63 }
  0x8f   :  { %v67_v3 = vmax.f32 %v65_v1, 0.0  ;;  %v68_v4 = vmax.f32 %v66_v2, 0.0 }
  0x91   :  { %v100_v5 = vsel %vm99_vm1, %v68_v4, %v67_v3 }
  0x92   :  { %294 = vmatmul.mubr.msk.f32.vlgmr.msra.gmra.mxu0 %vm101_vm2, %v100_v5 }
 0x152   :  { %v170_v21 = vpop.f32.mrf.mxu0 }
 0x153   :  { %v171_v22 = vadd.f32 %v170_v21, %v90_v19 }
 0x154   :  { %v172_v23 = vpop.f32.mrf.mxu0 }
 0x155   :  { %v173_v24 = vadd.f32 %v172_v23, %v94_v20  ;;  %v175_v26 = vmax.f32 %v171_v22, 0.0 }
 0x157   :  { %v176_v25 = vmax.f32 %v173_v24, 0.0 }
 0x159   :  { %280 = vmatprep.mubr.f32.mxu1 %v176_v25 }
 0x15a   :  { %281 = vmatmul.mubr.f32.vlgmr.msra.gmra.mxu1 %v175_v26 }
 0x21a   :  { %v328_v28 = vpop.f32.mrf.mxu1 }
 0x21c   :  { %v329_v30 = vpop.f32.mrf.mxu1 }
 0x21d   :  { %v330_v31 = vadd.f32 %v329_v30, %v328_v28 }
 0x21f   :  { %v283_v32 = vadd.f32 %v330_v31, %v295_v29 }
 0x221   :  { %334 = vtanh.f32 %v283_v32 }
 0x22e   :  { %v335_v33 = vpop.eup %334 }
 0x22f   :  { %288 = vst.msk [vmem:[%s550_s7] sm:$0x3] %vm287_vm3, %v335_v33 }

</bundles_post_ra>
